<compile_context>
chip_gen: v7x
topology: tpu7x:2x2x1
jax: 0.10.0
libtpu: 0.0.40
codegen_flags: <defaults>
</compile_context>

<pallas_src>
import functools

import jax
import jax.numpy as jnp
from jax import lax
from jax.experimental import pallas as pl
from jax.experimental.pallas import tpu as pltpu


def _clip_embedding_kernel(b_tile, seq_len, tok_ref, pos_ref, table_hbm, out_ref,
                           gather_sem):
    """One grid step = B_TILE batch elements.

    tok_ref    : (B*S,)          int32 SMEM  (scalar prefetch)
    pos_ref    : (S, D)          f32   VMEM  (full position-embedding table)
    table_hbm  : (V, D)          f32   HBM   (raw ref, manual DMA row gather)
    out_ref    : (B_TILE, S, D)  f32   VMEM  (gather rows land directly here)
    gather_sem : (1,) DMA semaphores     (single sem, aggregate wait)
    """
    g = pl.program_id(0)
    vocab = table_hbm.shape[0]
    base = g * (b_tile * seq_len)

    # Issue all B_TILE*S row-gather DMAs back-to-back so they overlap in the DMA
    # engine.  Outer loop over the batch tile is static (small); inner loop over
    # the sequence is partially unrolled so descriptor issue co-issues.
    for bi in range(b_tile):
        row_base = base + bi * seq_len

        def _issue(s, carry, bi=bi, row_base=row_base):
            # Clamp out-of-range ids: PyTorch nn.Embedding would raise; clamping
            # keeps an untrusted id from triggering an OOB DMA fault.
            t = jnp.clip(tok_ref[row_base + s], 0, vocab - 1)
            pltpu.make_async_copy(
                table_hbm.at[pl.ds(t, 1), :],
                out_ref.at[bi, pl.ds(s, 1), :],
                gather_sem.at[0],
            ).start()
            return carry

        lax.fori_loop(0, seq_len, _issue, None, unroll=min(8, seq_len))

    # Single aggregate wait: descriptor sized to the whole output block, i.e.
    # exactly the sum of bytes signalled by the B_TILE*S row copies above.
    pltpu.make_async_copy(out_ref, out_ref, gather_sem.at[0]).wait()

    # Fused position-embedding add: one (B_TILE, S, D) VPU add, lane-dense store.
    out_ref[...] = out_ref[...] + pos_ref[...]


def _pick_batch_tile(batch, target=8):
    """Largest divisor of `batch` <= target that still leaves >= 2 grid steps
    (keeps both v7x TensorCores busy under dimension_semantics=("parallel",))."""
    cap = max(1, min(target, batch // 2 if batch >= 2 else batch))
    for t in range(cap, 0, -1):
        if batch % t == 0:
            return t
    return 1


def clip_embedding(tokens, token_embedding, position_embedding, *, batch_tile=None):
    """tokens: (B, S) int; token_embedding: (V, D) f32; position_embedding: (S, D) f32."""
    batch, seq_len = tokens.shape
    vocab, dim = token_embedding.shape
    # PyTorch's `x += self.position_embedding` broadcasts (B,S,D) += (P,D), which
    # only type-checks when S == max_position_embeddings; we require the same.
    assert position_embedding.shape == (seq_len, dim), (
        "CLIPEmbedding forward requires seq_len == max_position_embeddings")

    if batch_tile is None:
        batch_tile = _pick_batch_tile(batch)
    assert batch % batch_tile == 0, "batch_tile must divide batch"

    tokens_flat = tokens.reshape(batch * seq_len).astype(jnp.int32)

    itemsize = jnp.dtype(token_embedding.dtype).itemsize
    # Double-buffered output block + double-buffered position table + headroom.
    vmem_bytes = 2 * (batch_tile + 1) * seq_len * dim * itemsize + (2 << 20)
    vmem_bytes = int(min(max(vmem_bytes, 8 << 20), 48 << 20))   # v7x-safe cap

    kernel = functools.partial(_clip_embedding_kernel, batch_tile, seq_len)

    grid_spec = pltpu.PrefetchScalarGridSpec(
        num_scalar_prefetch=1,                                   # tokens -> SMEM
        grid=(batch // batch_tile,),
        in_specs=[
            pl.BlockSpec((seq_len, dim), lambda g, tok: (0, 0)),  # position embedding
            pl.BlockSpec(memory_space=pl.ANY),                    # table stays in HBM
        ],
        out_specs=pl.BlockSpec((batch_tile, seq_len, dim), lambda g, tok: (g, 0, 0)),
        scratch_shapes=[
            pltpu.SemaphoreType.DMA((1,)),                        # one sem, aggregate wait
        ],
    )

    return pl.pallas_call(
        kernel,
        out_shape=jax.ShapeDtypeStruct((batch, seq_len, dim), token_embedding.dtype),
        grid_spec=grid_spec,
        compiler_params=pltpu.CompilerParams(
            dimension_semantics=("parallel",),        # batch tiles independent -> dual TC
            vmem_limit_bytes=vmem_bytes,
        ),
    )(tokens_flat, position_embedding, token_embedding)


if __name__ == "__main__":
    # Small shapes consistent with the module (D a multiple of 128 so stores are
    # lane-dense, as at real CLIP dims 512/768).
    vocab_size = 64
    embed_dim = 128
    max_position_embeddings = 8     # == seq_len so the broadcast add is valid
    seq_len = max_position_embeddings

    key = jax.random.PRNGKey(0)
    k_tok, k_emb, k_pos, k_tok2 = jax.random.split(key, 4)

    token_embedding = jax.random.normal(k_emb, (vocab_size, embed_dim), jnp.float32)
    position_embedding = 0.02 * jax.random.normal(
        k_pos, (max_position_embeddings, embed_dim), jnp.float32)

    def ref_fn(toks):
        return jnp.take(token_embedding, toks, axis=0) + position_embedding[None]

    ok = True

    # Check 1: batch=2 -> batch_tile=1, grid=2 (keeps two grid steps).
    tokens_a = jax.random.randint(k_tok, (2, seq_len), 0, vocab_size, jnp.int32)
    out_a = jax.block_until_ready(
        clip_embedding(tokens_a, token_embedding, position_embedding))
    ok &= out_a.shape == (2, seq_len, embed_dim)
    ok &= bool(jnp.allclose(out_a, ref_fn(tokens_a), atol=1e-6, rtol=1e-6))

    # Check 2: batch=4 -> batch_tile=2, grid=2 (exercises the batch-blocked path).
    tokens_b = jax.random.randint(k_tok2, (4, seq_len), 0, vocab_size, jnp.int32)
    out_b = jax.block_until_ready(
        clip_embedding(tokens_b, token_embedding, position_embedding))
    ok &= out_b.shape == (4, seq_len, embed_dim)
    ok &= bool(jnp.allclose(out_b, ref_fn(tokens_b), atol=1e-6, rtol=1e-6))

    assert ok, "mismatch vs reference"
    print("KERNEL_OK")
</pallas_src>

<mosaic_0001>
module attributes {stable_mosaic.version = 11 : i64} {
  func.func @_clip_embedding_kernel(%arg0: i32, %arg1: memref<16xi32, #tpu.memory_space<smem>>, %arg2: memref<8x128xf32, #tpu.memory_space<vmem>>, %arg3: memref<64x128xf32, #tpu.memory_space<any>>, %arg4: memref<1x8x128xf32, #tpu.memory_space<vmem>>, %arg5: memref<1x!tpu.dma_semaphore, #tpu.memory_space<semaphore_mem>>) attributes {dimension_semantics = [#tpu.dimension_semantics<parallel>], iteration_bounds = array<i64: 2>, scalar_prefetch = 1 : i64, scratch_operands = 1 : i64, tpu.core_type = #tpu.core_type<tc>, window_params = [{pipeline_mode = #tpu.pipeline_mode<synchronous>, transform_indices = @transform_0, window_bounds = array<i64: 8, 128>}, {}, {transform_indices = @transform_2, window_bounds = array<i64: 1, 8, 128>}]} {
    %c8_i32 = arith.constant 8 : i32
    %0 = arith.muli %arg0, %c8_i32 : i32
    %c0_i32 = arith.constant 0 : i32
    %1 = arith.addi %0, %c0_i32 : i32
    %c0_i32_0 = arith.constant 0 : i32
    %2 = arith.addi %1, %c0_i32_0 : i32
    %3 = arith.index_cast %2 : i32 to index
    %4 = memref.load %arg1[%3] : memref<16xi32, #tpu.memory_space<smem>>
    %c0_i32_1 = arith.constant 0 : i32
    %c63_i32 = arith.constant 63 : i32
    %5 = arith.maxsi %c0_i32_1, %4 : i32
    %6 = arith.minsi %c63_i32, %5 : i32
    %c0_i32_2 = arith.constant 0 : i32
    %c0_i32_3 = arith.constant 0 : i32
    %c0_i32_4 = arith.constant 0 : i32
    %7 = tpu.memref_slice %arg3[%6, %c0_i32_4] : memref<64x128xf32, #tpu.memory_space<any>> -> memref<1x128xf32, #tpu.memory_space<any>>
    %c0_i32_5 = arith.constant 0 : i32
    %8 = tpu.memref_slice %arg4[%c0_i32_2, %c0_i32_0, %c0_i32_5] : memref<1x8x128xf32, #tpu.memory_space<vmem>> -> memref<1x1x128xf32, #tpu.memory_space<vmem>>
    %9 = tpu.memref_squeeze %8 : memref<1x1x128xf32, #tpu.memory_space<vmem>> -> memref<1x128xf32, #tpu.memory_space<vmem>>
    %10 = tpu.memref_slice %arg5[%c0_i32_3] : memref<1x!tpu.dma_semaphore, #tpu.memory_space<semaphore_mem>> -> memref<1x!tpu.dma_semaphore, #tpu.memory_space<semaphore_mem>>
    %11 = tpu.memref_squeeze %10 : memref<1x!tpu.dma_semaphore, #tpu.memory_space<semaphore_mem>> -> memref<!tpu.dma_semaphore, #tpu.memory_space<semaphore_mem>>
    tpu.enqueue_dma source(%7 : memref<1x128xf32, #tpu.memory_space<any>>) target(%9 : memref<1x128xf32, #tpu.memory_space<vmem>>) target_semaphore(%11 : memref<!tpu.dma_semaphore, #tpu.memory_space<semaphore_mem>>)
    %c1_i32 = arith.constant 1 : i32
    %12 = arith.addi %1, %c1_i32 : i32
    %13 = arith.index_cast %12 : i32 to index
    %14 = memref.load %arg1[%13] : memref<16xi32, #tpu.memory_space<smem>>
    %c0_i32_6 = arith.constant 0 : i32
    %c63_i32_7 = arith.constant 63 : i32
    %15 = arith.maxsi %c0_i32_6, %14 : i32
    %16 = arith.minsi %c63_i32_7, %15 : i32
    %c0_i32_8 = arith.constant 0 : i32
    %c0_i32_9 = arith.constant 0 : i32
    %c0_i32_10 = arith.constant 0 : i32
    %17 = tpu.memref_slice %arg3[%16, %c0_i32_10] : memref<64x128xf32, #tpu.memory_space<any>> -> memref<1x128xf32, #tpu.memory_space<any>>
    %c0_i32_11 = arith.constant 0 : i32
    %18 = tpu.memref_slice %arg4[%c0_i32_8, %c1_i32, %c0_i32_11] : memref<1x8x128xf32, #tpu.memory_space<vmem>> -> memref<1x1x128xf32, #tpu.memory_space<vmem>>
    %19 = tpu.memref_squeeze %18 : memref<1x1x128xf32, #tpu.memory_space<vmem>> -> memref<1x128xf32, #tpu.memory_space<vmem>>
    %20 = tpu.memref_slice %arg5[%c0_i32_9] : memref<1x!tpu.dma_semaphore, #tpu.memory_space<semaphore_mem>> -> memref<1x!tpu.dma_semaphore, #tpu.memory_space<semaphore_mem>>
    %21 = tpu.memref_squeeze %20 : memref<1x!tpu.dma_semaphore, #tpu.memory_space<semaphore_mem>> -> memref<!tpu.dma_semaphore, #tpu.memory_space<semaphore_mem>>
    tpu.enqueue_dma source(%17 : memref<1x128xf32, #tpu.memory_space<any>>) target(%19 : memref<1x128xf32, #tpu.memory_space<vmem>>) target_semaphore(%21 : memref<!tpu.dma_semaphore, #tpu.memory_space<semaphore_mem>>)
    %c2_i32 = arith.constant 2 : i32
    %22 = arith.addi %1, %c2_i32 : i32
    %23 = arith.index_cast %22 : i32 to index
    %24 = memref.load %arg1[%23] : memref<16xi32, #tpu.memory_space<smem>>
    %c0_i32_12 = arith.constant 0 : i32
    %c63_i32_13 = arith.constant 63 : i32
    %25 = arith.maxsi %c0_i32_12, %24 : i32
    %26 = arith.minsi %c63_i32_13, %25 : i32
    %c0_i32_14 = arith.constant 0 : i32
    %c0_i32_15 = arith.constant 0 : i32
    %c0_i32_16 = arith.constant 0 : i32
    %27 = tpu.memref_slice %arg3[%26, %c0_i32_16] : memref<64x128xf32, #tpu.memory_space<any>> -> memref<1x128xf32, #tpu.memory_space<any>>
    %c0_i32_17 = arith.constant 0 : i32
    %28 = tpu.memref_slice %arg4[%c0_i32_14, %c2_i32, %c0_i32_17] : memref<1x8x128xf32, #tpu.memory_space<vmem>> -> memref<1x1x128xf32, #tpu.memory_space<vmem>>
    %29 = tpu.memref_squeeze %28 : memref<1x1x128xf32, #tpu.memory_space<vmem>> -> memref<1x128xf32, #tpu.memory_space<vmem>>
    %30 = tpu.memref_slice %arg5[%c0_i32_15] : memref<1x!tpu.dma_semaphore, #tpu.memory_space<semaphore_mem>> -> memref<1x!tpu.dma_semaphore, #tpu.memory_space<semaphore_mem>>
    %31 = tpu.memref_squeeze %30 : memref<1x!tpu.dma_semaphore, #tpu.memory_space<semaphore_mem>> -> memref<!tpu.dma_semaphore, #tpu.memory_space<semaphore_mem>>
    tpu.enqueue_dma source(%27 : memref<1x128xf32, #tpu.memory_space<any>>) target(%29 : memref<1x128xf32, #tpu.memory_space<vmem>>) target_semaphore(%31 : memref<!tpu.dma_semaphore, #tpu.memory_space<semaphore_mem>>)
    %c3_i32 = arith.constant 3 : i32
    %32 = arith.addi %1, %c3_i32 : i32
    %33 = arith.index_cast %32 : i32 to index
    %34 = memref.load %arg1[%33] : memref<16xi32, #tpu.memory_space<smem>>
    %c0_i32_18 = arith.constant 0 : i32
    %c63_i32_19 = arith.constant 63 : i32
    %35 = arith.maxsi %c0_i32_18, %34 : i32
    %36 = arith.minsi %c63_i32_19, %35 : i32
    %c0_i32_20 = arith.constant 0 : i32
    %c0_i32_21 = arith.constant 0 : i32
    %c0_i32_22 = arith.constant 0 : i32
    %37 = tpu.memref_slice %arg3[%36, %c0_i32_22] : memref<64x128xf32, #tpu.memory_space<any>> -> memref<1x128xf32, #tpu.memory_space<any>>
    %c0_i32_23 = arith.constant 0 : i32
    %38 = tpu.memref_slice %arg4[%c0_i32_20, %c3_i32, %c0_i32_23] : memref<1x8x128xf32, #tpu.memory_space<vmem>> -> memref<1x1x128xf32, #tpu.memory_space<vmem>>
    %39 = tpu.memref_squeeze %38 : memref<1x1x128xf32, #tpu.memory_space<vmem>> -> memref<1x128xf32, #tpu.memory_space<vmem>>
    %40 = tpu.memref_slice %arg5[%c0_i32_21] : memref<1x!tpu.dma_semaphore, #tpu.memory_space<semaphore_mem>> -> memref<1x!tpu.dma_semaphore, #tpu.memory_space<semaphore_mem>>
    %41 = tpu.memref_squeeze %40 : memref<1x!tpu.dma_semaphore, #tpu.memory_space<semaphore_mem>> -> memref<!tpu.dma_semaphore, #tpu.memory_space<semaphore_mem>>
    tpu.enqueue_dma source(%37 : memref<1x128xf32, #tpu.memory_space<any>>) target(%39 : memref<1x128xf32, #tpu.memory_space<vmem>>) target_semaphore(%41 : memref<!tpu.dma_semaphore, #tpu.memory_space<semaphore_mem>>)
    %c4_i32 = arith.constant 4 : i32
    %42 = arith.addi %1, %c4_i32 : i32
    %43 = arith.index_cast %42 : i32 to index
    %44 = memref.load %arg1[%43] : memref<16xi32, #tpu.memory_space<smem>>
    %c0_i32_24 = arith.constant 0 : i32
    %c63_i32_25 = arith.constant 63 : i32
    %45 = arith.maxsi %c0_i32_24, %44 : i32
    %46 = arith.minsi %c63_i32_25, %45 : i32
    %c0_i32_26 = arith.constant 0 : i32
    %c0_i32_27 = arith.constant 0 : i32
    %c0_i32_28 = arith.constant 0 : i32
    %47 = tpu.memref_slice %arg3[%46, %c0_i32_28] : memref<64x128xf32, #tpu.memory_space<any>> -> memref<1x128xf32, #tpu.memory_space<any>>
    %c0_i32_29 = arith.constant 0 : i32
    %48 = tpu.memref_slice %arg4[%c0_i32_26, %c4_i32, %c0_i32_29] : memref<1x8x128xf32, #tpu.memory_space<vmem>> -> memref<1x1x128xf32, #tpu.memory_space<vmem>>
    %49 = tpu.memref_squeeze %48 : memref<1x1x128xf32, #tpu.memory_space<vmem>> -> memref<1x128xf32, #tpu.memory_space<vmem>>
    %50 = tpu.memref_slice %arg5[%c0_i32_27] : memref<1x!tpu.dma_semaphore, #tpu.memory_space<semaphore_mem>> -> memref<1x!tpu.dma_semaphore, #tpu.memory_space<semaphore_mem>>
    %51 = tpu.memref_squeeze %50 : memref<1x!tpu.dma_semaphore, #tpu.memory_space<semaphore_mem>> -> memref<!tpu.dma_semaphore, #tpu.memory_space<semaphore_mem>>
    tpu.enqueue_dma source(%47 : memref<1x128xf32, #tpu.memory_space<any>>) target(%49 : memref<1x128xf32, #tpu.memory_space<vmem>>) target_semaphore(%51 : memref<!tpu.dma_semaphore, #tpu.memory_space<semaphore_mem>>)
    %c5_i32 = arith.constant 5 : i32
    %52 = arith.addi %1, %c5_i32 : i32
    %53 = arith.index_cast %52 : i32 to index
    %54 = memref.load %arg1[%53] : memref<16xi32, #tpu.memory_space<smem>>
    %c0_i32_30 = arith.constant 0 : i32
    %c63_i32_31 = arith.constant 63 : i32
    %55 = arith.maxsi %c0_i32_30, %54 : i32
    %56 = arith.minsi %c63_i32_31, %55 : i32
    %c0_i32_32 = arith.constant 0 : i32
    %c0_i32_33 = arith.constant 0 : i32
    %c0_i32_34 = arith.constant 0 : i32
    %57 = tpu.memref_slice %arg3[%56, %c0_i32_34] : memref<64x128xf32, #tpu.memory_space<any>> -> memref<1x128xf32, #tpu.memory_space<any>>
    %c0_i32_35 = arith.constant 0 : i32
    %58 = tpu.memref_slice %arg4[%c0_i32_32, %c5_i32, %c0_i32_35] : memref<1x8x128xf32, #tpu.memory_space<vmem>> -> memref<1x1x128xf32, #tpu.memory_space<vmem>>
    %59 = tpu.memref_squeeze %58 : memref<1x1x128xf32, #tpu.memory_space<vmem>> -> memref<1x128xf32, #tpu.memory_space<vmem>>
    %60 = tpu.memref_slice %arg5[%c0_i32_33] : memref<1x!tpu.dma_semaphore, #tpu.memory_space<semaphore_mem>> -> memref<1x!tpu.dma_semaphore, #tpu.memory_space<semaphore_mem>>
    %61 = tpu.memref_squeeze %60 : memref<1x!tpu.dma_semaphore, #tpu.memory_space<semaphore_mem>> -> memref<!tpu.dma_semaphore, #tpu.memory_space<semaphore_mem>>
    tpu.enqueue_dma source(%57 : memref<1x128xf32, #tpu.memory_space<any>>) target(%59 : memref<1x128xf32, #tpu.memory_space<vmem>>) target_semaphore(%61 : memref<!tpu.dma_semaphore, #tpu.memory_space<semaphore_mem>>)
    %c6_i32 = arith.constant 6 : i32
    %62 = arith.addi %1, %c6_i32 : i32
    %63 = arith.index_cast %62 : i32 to index
    %64 = memref.load %arg1[%63] : memref<16xi32, #tpu.memory_space<smem>>
    %c0_i32_36 = arith.constant 0 : i32
    %c63_i32_37 = arith.constant 63 : i32
    %65 = arith.maxsi %c0_i32_36, %64 : i32
    %66 = arith.minsi %c63_i32_37, %65 : i32
    %c0_i32_38 = arith.constant 0 : i32
    %c0_i32_39 = arith.constant 0 : i32
    %c0_i32_40 = arith.constant 0 : i32
    %67 = tpu.memref_slice %arg3[%66, %c0_i32_40] : memref<64x128xf32, #tpu.memory_space<any>> -> memref<1x128xf32, #tpu.memory_space<any>>
    %c0_i32_41 = arith.constant 0 : i32
    %68 = tpu.memref_slice %arg4[%c0_i32_38, %c6_i32, %c0_i32_41] : memref<1x8x128xf32, #tpu.memory_space<vmem>> -> memref<1x1x128xf32, #tpu.memory_space<vmem>>
    %69 = tpu.memref_squeeze %68 : memref<1x1x128xf32, #tpu.memory_space<vmem>> -> memref<1x128xf32, #tpu.memory_space<vmem>>
    %70 = tpu.memref_slice %arg5[%c0_i32_39] : memref<1x!tpu.dma_semaphore, #tpu.memory_space<semaphore_mem>> -> memref<1x!tpu.dma_semaphore, #tpu.memory_space<semaphore_mem>>
    %71 = tpu.memref_squeeze %70 : memref<1x!tpu.dma_semaphore, #tpu.memory_space<semaphore_mem>> -> memref<!tpu.dma_semaphore, #tpu.memory_space<semaphore_mem>>
    tpu.enqueue_dma source(%67 : memref<1x128xf32, #tpu.memory_space<any>>) target(%69 : memref<1x128xf32, #tpu.memory_space<vmem>>) target_semaphore(%71 : memref<!tpu.dma_semaphore, #tpu.memory_space<semaphore_mem>>)
    %c7_i32 = arith.constant 7 : i32
    %72 = arith.addi %1, %c7_i32 : i32
    %73 = arith.index_cast %72 : i32 to index
    %74 = memref.load %arg1[%73] : memref<16xi32, #tpu.memory_space<smem>>
    %c0_i32_42 = arith.constant 0 : i32
    %c63_i32_43 = arith.constant 63 : i32
    %75 = arith.maxsi %c0_i32_42, %74 : i32
    %76 = arith.minsi %c63_i32_43, %75 : i32
    %c0_i32_44 = arith.constant 0 : i32
    %c0_i32_45 = arith.constant 0 : i32
    %c0_i32_46 = arith.constant 0 : i32
    %77 = tpu.memref_slice %arg3[%76, %c0_i32_46] : memref<64x128xf32, #tpu.memory_space<any>> -> memref<1x128xf32, #tpu.memory_space<any>>
    %c0_i32_47 = arith.constant 0 : i32
    %78 = tpu.memref_slice %arg4[%c0_i32_44, %c7_i32, %c0_i32_47] : memref<1x8x128xf32, #tpu.memory_space<vmem>> -> memref<1x1x128xf32, #tpu.memory_space<vmem>>
    %79 = tpu.memref_squeeze %78 : memref<1x1x128xf32, #tpu.memory_space<vmem>> -> memref<1x128xf32, #tpu.memory_space<vmem>>
    %80 = tpu.memref_slice %arg5[%c0_i32_45] : memref<1x!tpu.dma_semaphore, #tpu.memory_space<semaphore_mem>> -> memref<1x!tpu.dma_semaphore, #tpu.memory_space<semaphore_mem>>
    %81 = tpu.memref_squeeze %80 : memref<1x!tpu.dma_semaphore, #tpu.memory_space<semaphore_mem>> -> memref<!tpu.dma_semaphore, #tpu.memory_space<semaphore_mem>>
    tpu.enqueue_dma source(%77 : memref<1x128xf32, #tpu.memory_space<any>>) target(%79 : memref<1x128xf32, #tpu.memory_space<vmem>>) target_semaphore(%81 : memref<!tpu.dma_semaphore, #tpu.memory_space<semaphore_mem>>)
    %c8_i32_48 = arith.constant 8 : i32
    %c0_i32_49 = arith.constant 0 : i32
    %82 = tpu.memref_slice %arg5[%c0_i32_49] : memref<1x!tpu.dma_semaphore, #tpu.memory_space<semaphore_mem>> -> memref<1x!tpu.dma_semaphore, #tpu.memory_space<semaphore_mem>>
    %83 = tpu.memref_squeeze %82 : memref<1x!tpu.dma_semaphore, #tpu.memory_space<semaphore_mem>> -> memref<!tpu.dma_semaphore, #tpu.memory_space<semaphore_mem>>
    tpu.wait_dma2 semaphore(%83 : memref<!tpu.dma_semaphore, #tpu.memory_space<semaphore_mem>>) src(%arg4 : memref<1x8x128xf32, #tpu.memory_space<vmem>>) dst(%arg4 : memref<1x8x128xf32, #tpu.memory_space<vmem>>)
    %c0 = arith.constant 0 : index
    %c0_50 = arith.constant 0 : index
    %c0_51 = arith.constant 0 : index
    %84 = vector.load %arg4[%c0, %c0_50, %c0_51] : memref<1x8x128xf32, #tpu.memory_space<vmem>>, vector<1x8x128xf32>
    %c0_52 = arith.constant 0 : index
    %c0_53 = arith.constant 0 : index
    %85 = vector.load %arg2[%c0_52, %c0_53] : memref<8x128xf32, #tpu.memory_space<vmem>>, vector<8x128xf32>
    %86 = vector.shape_cast %85 : vector<8x128xf32> to vector<1x8x128xf32>
    %87 = arith.addf %84, %86 : vector<1x8x128xf32>
    %c0_54 = arith.constant 0 : index
    %c0_55 = arith.constant 0 : index
    %c0_56 = arith.constant 0 : index
    %88 = vector.load %arg4[%c0_54, %c0_55, %c0_56] : memref<1x8x128xf32, #tpu.memory_space<vmem>>, vector<1x8x128xf32>
    tpu.vector_store %arg4[%c0_54, %c0_55, %c0_56], %87 {strides = array<i32>} : memref<1x8x128xf32, #tpu.memory_space<vmem>>, vector<1x8x128xf32>,
    return
  }
  func.func @transform_0(%arg0: i32, %arg1: memref<16xi32, #tpu.memory_space<smem>>) -> (i32, i32) {
    %c0_i32 = arith.constant 0 : i32
    %c0_i32_0 = arith.constant 0 : i32
    %c0_i32_1 = arith.constant 0 : i32
    return %c0_i32, %c0_i32_0 : i32, i32
  }
  func.func @transform_2(%arg0: i32, %arg1: memref<16xi32, #tpu.memory_space<smem>>) -> (i32, i32, i32) {
    %c0_i32 = arith.constant 0 : i32
    %c0_i32_0 = arith.constant 0 : i32
    %c0_i32_1 = arith.constant 0 : i32
    return %arg0, %c0_i32, %c0_i32_0 : i32, i32, i32
  }
}

</mosaic_0001>

<bundles_post_ra>
// kernel: tpu_custom_call.1
= control target key start
LH: loop header
LB: loop body
LE: loop exit
PB: predicated region body
PF: predicated region fallthrough
CT: control target
= control target key end

     0   :  { %s1156_s0 = inlined_call_operand.hbm [shape: s32[16], index: 0, kind: input, shape index: {}]   ;;  %s1157_s1 = inlined_call_operand.hbm [shape: f32[8,128], index: 1, kind: input, shape index: {}]   ;;  %s1158_s2 = inlined_call_operand.hbm [shape: f32[64,128], index: 2, kind: input, shape index: {}]   ;;  %s1159_s3 = inlined_call_operand.hbm [shape: f32[2,8,128], index: 3, kind: output, shape index: {}]  }
   0x1   :  { %1168 = sst [smem:[#allocation34_spill]] %s1157_s1  ;;  %s503_s14 = scalar_lea.hbm %s1156_s0, 16 }
   0x2   :  { %p504_p0 = scmp.ne.s32.totalorder %s1156_s0, %s503_s14  ;;  %p507_p1 = scmp.lt.u32.totalorder %s503_s14, %s1156_s0 }
   0x4   :  { %p509_p2 = pnand %p507_p1, %p504_p0 }
   0x6   :  { %512 = shalt.err (!%p509_p2)  }
   0x7   :  { %s805_s19 = smov [#allocation4]  }
   0x8   :  { %9 = dma.hbm_to_smem %s1156_s0, 16, %s805_s19, [#allocation3] }
   0x9   :  { %777 = dma.done.wait [#allocation3], 16 }
   0xa   :  { %778 = vsyncadd [#allocation3], 4294967280 }
   0xb   :  { %11 = sfence }
   0xc   :  { %12 = vsyncpa [#allocation6], 0 }
   0xd   :  { %13 = vsyncpa [#allocation7], 0 }
   0xe   :  { %15 = vsyncpa [#allocation7 + $0x1], 0  ;;  %s840_s22 = smov 0   ;;  %s842_s23 = smov 0  }
   0xf   :  { %s844_s24 = smov 0   ;;  %s846_s25 = smov 0  }
  0x10 LB: > { %1169 = sst [smem:[#allocation31_spill]] %s799_s24  ;;  %s861_s0 = sadd.s32 4294967295, %s803_s25   ;;  %s803_s25 = sphi %s846_s25, %s1185_s25   ;;  %s799_s24 = sphi %s844_s24, %s1187_s24   ;;  %s795_s23 = sphi %s842_s23, %s1189_s23   ;;  %s791_s22 = sphi %s840_s22, %s1188_s22  }
  0x11   : > { %s376_s26 = sadd.s32 4294967294, %s803_s25   ;;  %s865_s27 = sadd.s32 1, %s803_s25  }
  0x12   : > { %1170 = sst [smem:[#allocation32_spill]] %s865_s27  ;;  %s49_s28 = sadd.s32 1, %s799_s24 }
  0x13   : > { %s46_s29 = ssub.s32 %s803_s25, %s865_s27  ;;  %p59_p3 = scmp.ne.s32.totalorder %s799_s24, %s795_s23 }
  0x14   : > { %p47_p4 = scmp.eq.s32.totalorder %s46_s29, 0  ;;  %p60_p5 = scmp.eq.s32.totalorder %s861_s0, 1 }
  0x15   : > { %p65_p6 = scmp.ne.s32.totalorder %s795_s23, %s791_s22  ;;  %p66_p7 = scmp.eq.s32.totalorder %s376_s26, 1 }
  0x16   : > { %s876_s30 = scalar_select %p47_p4, %s799_s24, %s49_s28  }
  0x17   : > { %p878_p8 = por %p60_p5, %p59_p3  ;;  %p882_p9 = por %p66_p7, %p65_p6 }
  0x18   : > { %1171 = sst [smem:[#allocation33_spill]] %s876_s30  ;;  %p377_p10 = scmp.ge.s32.totalorder %s803_s25, 1 }
  0x19   : > { %s1172_s4 = scalar_select %p878_p8, 1, 0 }
  0x1a   : > { %s1173_s5 = scalar_select %p882_p9, 1, 0 }
  0x1b   : > { %p73_p11 = scmp.lt.s32.totalorder %s803_s25, 3  ;;  %p1160_p12 = scmp.eq.s32.totalorder %s861_s0, 0 }
  0x1c   : > { %s806_s7 = smov [#allocation5]   ;;  %s1176_s1 = sld [smem:[#allocation34_spill]] }
  0x1d   : > { %p889_p13 = pnand %p377_p10, %p73_p11  ;;  %s86_s8 = sshll.u32 %s806_s7, 4  ;;  %s87_s8 = int_to_ptr.vmem [resolvable:$true] %s86_s8 }
  0x1f   : > { %s1174_s6 = scalar_select %p889_p13, 1, 0 }
  0x20   : > { %p458_p0 = pneg %p889_p13 }
  0x22   : > { %p897_p1 = pnand %p1160_p12, %p458_p0  ;;  %s513_s12 = scalar_lea.hbm %s1176_s1, 128 }
  0x23   : > { %p514_p2 = scmp.ne.s32.totalorder %s1176_s1, %s513_s12  ;;  %p520_p6 = scmp.lt.u32.totalorder %s513_s12, %s1176_s1 }
  0x24   : > { %p515_p3 = pneg %p897_p1 }
  0x26   : > { %p516_p4 = pnand %p515_p3, %p514_p2 }
  0x28   : > { %p517_p5 = pneg %p516_p4 }
  0x2a   : > { %p522_p7 = pnand %p520_p6, %p517_p5 }
  0x2c   : > { %525 = shalt.err (!%p522_p7)
}
  0x2d   : > { %s526_s17 = scalar_lea.vmem %s87_s8, 128  ;;  %p534_p12 = scmp.lt.s32.totalorder %s87_s8, %s87_s8 }
  0x2e   : > { %p527_p10 = scmp.ne.s32.totalorder %s87_s8, %s526_s17  ;;  %p535_p9 = scmp.lt.s32.totalorder %s526_s17, %s526_s17 }
  0x30   : > { %p529_p11 = pnand %p527_p10, %p515_p3  ;;  %p536_p8 = por %p535_p9, %p534_p12 }
  0x32   : > { %p530_p0 = pneg %p529_p11 }
  0x34   : > { %p537_p13 = pnand %p536_p8, %p530_p0 }
  0x36   : > { %540 = shalt.err (!%p537_p13)
}
  0x37   : > { %461 = dma.hbm_to_vmem [thread:$0]  (!%p897_p1), %s1176_s1, 128, %s87_s8, [#allocation6]  }
  0x38   : > { %p1177_p2 = scmp.ne.s32.totalorder %s1174_s6, 0 }
  0x39   : > { %p1178_p4 = scmp.eq.s32.totalorder (!%p1177_p2), %s861_s0, 0 }
  0x3a   : > { %99 = sbr.rel (%p1177_p2) target bundleno = 298 (0x12a), region = 24 }
  0x41   : > { %780 = dma.done.wait (%p1178_p4), [#allocation6], 128   ;;  %p1179_p3 = pmov %p1178_p4 }
  0x42   : > { %s1163_s20 = sand.u32 1, %s795_s23   ;;  %s925_s21 = sshll.u32 %s861_s0, 3 }
  0x43   : > { %782 = vsyncadd (%p1179_p3), [#allocation6], 4294967168  ;;  %s381_s26 = sshll.u32 %s1163_s20, 3  ;;  %s115_s28 = sld [smem:[#allocation4 + %s925_s21]] }
  0x44   : > { %s133_s29 = sadd.s32 1, %s925_s21  ;;  %s931_s6 = scalar_lea.vmem [#allocation8], %s381_s26 }
  0x45   : > { %s129_s7 = sshll.u32 %s931_s6, 4  ;;  %s934_s8 = sld [smem:[#allocation4 + %s133_s29]]  ;;  %s936_s7 = int_to_ptr.vmem [resolvable:$true] %s129_s7 }
  0x46   : > { %s141_s9 = scalar_lea.vmem %s931_s6, 1 [#allocation8]  ;;  %s153_s11 = sadd.s32 2, %s925_s21 }
  0x47   : > { %s149_s10 = sshll.u32 %s141_s9, 4  ;;  %s942_s12 = sld [smem:[#allocation4 + %s153_s11]]  ;;  %s940_s10 = int_to_ptr.vmem [resolvable:$true] %s149_s10 }
  0x48   : > { %s161_s13 = scalar_lea.vmem %s931_s6, 2 [#allocation8]  ;;  %s957_s11 = scalar_lea.hbm %s1158_s2, 1024 }
  0x49   : > { %p116_p8 = scmp.gt.s32.totalorder %s115_s28, 0  ;;  %p383_p9 = scmp.lt.s32.totalorder %s115_s28, 63 }
  0x4b   : > { %s1191_s28 = smov (!%p116_p8, %s115_s28), 0  ;;  %p135_p12 = scmp.gt.s32.totalorder %s934_s8, 0 }
  0x4c   : > { %p389_p13 = scmp.lt.s32.totalorder %s934_s8, 63  ;;  %s1193_s28 = smov (!%p383_p9, %s1191_s28), 63 }
  0x4d   : > { %s136_s15 = scalar_select %p135_p12, %s934_s8, 0 }
  0x4e   : > { %s388_s16 = sshll.u32 %s1193_s28, 4  ;;  %p155_p1 = scmp.gt.s32.totalorder %s942_s12, 0 }
  0x4f   : > { %s121_s19 = scalar_lea.hbm %s1158_s2, %s388_s16  ;;  %p395_p5 = scmp.lt.s32.totalorder %s942_s12, 63 }
  0x50   : > { %s541_s26 = scalar_lea.hbm %s121_s19, 16  ;;  %p544_p7 = scmp.lt.u32.totalorder %s121_s19, %s1158_s2 }
  0x51   : > { %p542_p6 = scmp.ne.s32.totalorder %s121_s19, %s541_s26  ;;  %p545_p10 = scmp.lt.u32.totalorder %s957_s11, %s541_s26 }
  0x52   : > { %p547_p0 = scmp.lt.u32.totalorder %s541_s26, %s121_s19 }
  0x53   : > { %p546_p11 = por %p545_p10, %p544_p7 }
  0x55   : > { %p548_p2 = por %p547_p0, %p546_p11 }
  0x57   : > { %p549_p4 = pnand %p548_p2, %p542_p6 }
  0x59   : > { %552 = shalt.err (!%p549_p4)  }
  0x5a   : > { %s553_s28 = scalar_lea.vmem %s936_s7, 16  ;;  %s807_s16 = smov [#allocation8]  }
  0x5b   : > { %p554_p3 = scmp.ne.s32.totalorder %s936_s7, %s553_s28  ;;  %s555_s17 = sshll.u32 %s807_s16, 4  ;;  %s965_s17 = int_to_ptr.vmem [resolvable:$false] %s555_s17 }
  0x5c   : > { %s968_s20 = scalar_lea.vmem %s965_s17, 256  ;;  %p1165_p8 = scmp.lt.s32.totalorder %s936_s7, %s965_s17 }
  0x5d   : > { %p559_p9 = scmp.lt.s32.totalorder %s968_s20, %s553_s28 }
  0x5f   : > { %p560_p12 = por %p559_p9, %p1165_p8 }
  0x61   : > { %p561_p6 = pnand %p560_p12, %p554_p3 }
  0x63   : > { %564 = shalt.err (!%p561_p6)  }
  0x64   : > { %132 = dma.hbm_to_vmem [thread:$0]  %s121_s19, 16, %s936_s7, [#allocation2] }
  0x65   : > { %s1195_s15 = smov (!%p389_p13, %s136_s15), 63  ;;  %s169_s26 = sshll.u32 %s161_s13, 4  ;;  %s987_s26 = int_to_ptr.vmem [resolvable:$true] %s169_s26 }
  0x66   : > { %s156_s14 = scalar_select %p155_p1, %s942_s12, 0 }
  0x67   : > { %s394_s18 = sshll.u32 %s1195_s15, 4 }
  0x68   : > { %s140_s28 = scalar_lea.hbm %s1158_s2, %s394_s18 }
  0x69   : > { %s565_s16 = scalar_lea.hbm %s140_s28, 16  ;;  %p568_p10 = scmp.lt.u32.totalorder %s140_s28, %s1158_s2 }
  0x6a   : > { %p566_p7 = scmp.ne.s32.totalorder %s140_s28, %s565_s16  ;;  %p569_p11 = scmp.lt.u32.totalorder %s957_s11, %s565_s16 }
  0x6b   : > { %p571_p13 = scmp.lt.u32.totalorder %s565_s16, %s140_s28 }
  0x6c   : > { %p570_p0 = por %p569_p11, %p568_p10 }
  0x6e   : > { %p572_p2 = por %p571_p13, %p570_p0 }
  0x70   : > { %p573_p1 = pnand %p572_p2, %p566_p7 }
  0x72   : > { %576 = shalt.err (!%p573_p1)  }
  0x73   : > { %s577_s8 = scalar_lea.vmem %s940_s10, 16  ;;  %p582_p3 = scmp.lt.s32.totalorder %s940_s10, %s965_s17 }
  0x74   : > { %p578_p4 = scmp.ne.s32.totalorder %s940_s10, %s577_s8  ;;  %p583_p9 = scmp.lt.s32.totalorder %s968_s20, %s577_s8 }
  0x76   : > { %p584_p12 = por %p583_p9, %p582_p3 }
  0x78   : > { %p585_p6 = pnand %p584_p12, %p578_p4 }
  0x7a   : > { %588 = shalt.err (!%p585_p6)  }
  0x7b   : > { %152 = dma.hbm_to_vmem [thread:$0]  %s140_s28, 16, %s940_s10, [#allocation2] }
  0x7c   : > { %s1197_s14 = smov (!%p395_p5, %s156_s14), 63  ;;  %s1180_s1 = sadd.s32 3, %s925_s21 }
  0x7d   : > { %s1003_s30 = sld [smem:[#allocation4 + %s1180_s1]]  ;;  %s181_s13 = scalar_lea.vmem %s931_s6, 3 [#allocation8] }
  0x7e   : > { %s400_s15 = sshll.u32 %s1197_s14, 4  ;;  %s189_s9 = sshll.u32 %s181_s13, 4  ;;  %s1021_s9 = int_to_ptr.vmem [resolvable:$true] %s189_s9 }
  0x7f   : > { %s160_s29 = scalar_lea.hbm %s1158_s2, %s400_s15 }
  0x80   : > { %s589_s16 = scalar_lea.hbm %s160_s29, 16  ;;  %p592_p10 = scmp.lt.u32.totalorder %s160_s29, %s1158_s2 }
  0x81   : > { %p590_p7 = scmp.ne.s32.totalorder %s160_s29, %s589_s16  ;;  %p593_p11 = scmp.lt.u32.totalorder %s957_s11, %s589_s16 }
  0x82   : > { %p595_p13 = scmp.lt.u32.totalorder %s589_s16, %s160_s29 }
  0x83   : > { %p594_p0 = por %p593_p11, %p592_p10 }
  0x85   : > { %p596_p5 = por %p595_p13, %p594_p0 }
  0x87   : > { %p597_p2 = pnand %p596_p5, %p590_p7 }
  0x89   : > { %600 = shalt.err (!%p597_p2)  }
  0x8a   : > { %s601_s10 = scalar_lea.vmem %s987_s26, 16  ;;  %p606_p4 = scmp.lt.s32.totalorder %s987_s26, %s965_s17 }
  0x8b   : > { %p602_p1 = scmp.ne.s32.totalorder %s987_s26, %s601_s10  ;;  %p607_p3 = scmp.lt.s32.totalorder %s968_s20, %s601_s10 }
  0x8d   : > { %p608_p9 = por %p607_p3, %p606_p4 }
  0x8f   : > { %p609_p12 = pnand %p608_p9, %p602_p1 }
  0x91   : > { %612 = shalt.err (!%p609_p12)  }
  0x92   : > { %172 = dma.hbm_to_vmem [thread:$0]  %s160_s29, 16, %s987_s26, [#allocation2] }
  0x93   : > { %s193_s24 = sadd.s32 4, %s925_s21  ;;  %s201_s12 = scalar_lea.vmem %s931_s6, 4 [#allocation8] }
  0x94   : > { %s1023_s14 = sld [smem:[#allocation4 + %s193_s24]]  ;;  %p175_p6 = scmp.gt.s32.totalorder %s1003_s30, 0 }
  0x95   : > { %p401_p7 = scmp.lt.s32.totalorder %s1003_s30, 63  ;;  %s209_s28 = sshll.u32 %s201_s12, 4  ;;  %s1033_s28 = int_to_ptr.vmem [resolvable:$true] %s209_s28 }
  0x96   : > { %s213_s1 = sadd.s32 5, %s925_s21  ;;  %s1199_s30 = smov (!%p175_p6, %s1003_s30), 0 }
  0x97   : > { %s1029_s13 = sld [smem:[#allocation4 + %s213_s1]]  ;;  %s221_s15 = scalar_lea.vmem %s931_s6, 5 [#allocation8] }
  0x98   : > { %s1201_s30 = smov (!%p401_p7, %s1199_s30), 63  ;;  %s1039_s16 = sshll.u32 %s221_s15, 4  ;;  %s230_s16 = int_to_ptr.vmem [resolvable:$true] %s1039_s16 }
  0x99   : > { %s406_s26 = sshll.u32 %s1201_s30, 4 }
  0x9a   : > { %p195_p10 = scmp.gt.s32.totalorder %s1023_s14, 0  ;;  %p407_p11 = scmp.lt.s32.totalorder %s1023_s14, 63 }
  0x9b   : > { %s180_s29 = scalar_lea.hbm %s1158_s2, %s406_s26 }
  0x9c   : > { %s613_s8 = scalar_lea.hbm %s180_s29, 16  ;;  %p616_p13 = scmp.lt.u32.totalorder %s180_s29, %s1158_s2 }
  0x9d   : > { %p614_p0 = scmp.ne.s32.totalorder %s180_s29, %s613_s8  ;;  %p617_p5 = scmp.lt.u32.totalorder %s957_s11, %s613_s8 }
  0x9e   : > { %p619_p1 = scmp.lt.u32.totalorder %s613_s8, %s180_s29 }
  0x9f   : > { %p618_p2 = por %p617_p5, %p616_p13 }
  0xa1   : > { %p620_p4 = por %p619_p1, %p618_p2 }
  0xa3   : > { %p621_p3 = pnand %p620_p4, %p614_p0 }
  0xa5   : > { %624 = shalt.err (!%p621_p3)  }
  0xa6   : > { %s625_s30 = scalar_lea.vmem %s1021_s9, 16  ;;  %p630_p12 = scmp.lt.s32.totalorder %s1021_s9, %s965_s17 }
  0xa7   : > { %p626_p9 = scmp.ne.s32.totalorder %s1021_s9, %s625_s30  ;;  %p631_p6 = scmp.lt.s32.totalorder %s968_s20, %s625_s30 }
  0xa9   : > { %p632_p7 = por %p631_p6, %p630_p12 }
  0xab   : > { %p633_p8 = pnand %p632_p7, %p626_p9 }
  0xad   : > { %636 = shalt.err (!%p633_p8)  }
  0xae   : > { %192 = dma.hbm_to_vmem [thread:$0]  %s180_s29, 16, %s1021_s9, [#allocation2] }
  0xaf   : > { %s196_s12 = scalar_select %p195_p10, %s1023_s14, 0 }
  0xb0   : > { %p215_p0 = scmp.gt.s32.totalorder %s1029_s13, 0  ;;  %p413_p13 = scmp.lt.s32.totalorder %s1029_s13, 63 }
  0xb1   : > { %s1203_s12 = smov (!%p407_p11, %s196_s12), 63  ;;  %s233_s26 = sadd.s32 6, %s925_s21 }
  0xb2   : > { %s216_s1 = scalar_select %p215_p0, %s1029_s13, 0 }
  0xb3   : > { %s412_s15 = sshll.u32 %s1203_s12, 4  ;;  %s1063_s10 = sld [smem:[#allocation4 + %s233_s26]] }
  0xb4   : > { %s200_s8 = scalar_lea.hbm %s1158_s2, %s412_s15 }
  0xb5   : > { %s637_s24 = scalar_lea.hbm %s200_s8, 16  ;;  %p640_p5 = scmp.lt.u32.totalorder %s200_s8, %s1158_s2 }
  0xb6   : > { %p638_p8 = scmp.ne.s32.totalorder %s200_s8, %s637_s24  ;;  %p641_p10 = scmp.lt.u32.totalorder %s957_s11, %s637_s24 }
  0xb7   : > { %p643_p1 = scmp.lt.u32.totalorder %s637_s24, %s200_s8 }
  0xb8   : > { %p642_p2 = por %p641_p10, %p640_p5 }
  0xba   : > { %p644_p4 = por %p643_p1, %p642_p2 }
  0xbc   : > { %p645_p11 = pnand %p644_p4, %p638_p8 }
  0xbe   : > { %648 = shalt.err (!%p645_p11)  }
  0xbf   : > { %s649_s9 = scalar_lea.vmem %s1033_s28, 16  ;;  %p654_p9 = scmp.lt.s32.totalorder %s1033_s28, %s965_s17 }
  0xc0   : > { %p650_p3 = scmp.ne.s32.totalorder %s1033_s28, %s649_s9  ;;  %p655_p12 = scmp.lt.s32.totalorder %s968_s20, %s649_s9 }
  0xc2   : > { %p656_p6 = por %p655_p12, %p654_p9 }
  0xc4   : > { %p657_p7 = pnand %p656_p6, %p650_p3 }
  0xc6   : > { %660 = shalt.err (!%p657_p7)  }
  0xc7   : > { %212 = dma.hbm_to_vmem [thread:$0]  %s200_s8, 16, %s1033_s28, [#allocation2] }
  0xc8   : > { %s1205_s1 = smov (!%p413_p13, %s216_s1), 63  ;;  %s241_s14 = scalar_lea.vmem %s931_s6, 6 [#allocation8] }
  0xc9   : > { %s418_s27 = sshll.u32 %s1205_s1, 4  ;;  %s253_s26 = sadd.s32 7, %s925_s21 }
  0xca   : > { %s220_s15 = scalar_lea.hbm %s1158_s2, %s418_s27 }
  0xcb   : > { %s661_s19 = scalar_lea.hbm %s220_s15, 16  ;;  %p664_p8 = scmp.lt.u32.totalorder %s220_s15, %s1158_s2 }
  0xcc   : > { %p662_p0 = scmp.ne.s32.totalorder %s220_s15, %s661_s19  ;;  %p665_p5 = scmp.lt.u32.totalorder %s957_s11, %s661_s19 }
  0xcd   : > { %p667_p2 = scmp.lt.u32.totalorder %s661_s19, %s220_s15 }
  0xce   : > { %p666_p10 = por %p665_p5, %p664_p8 }
  0xd0   : > { %p668_p1 = por %p667_p2, %p666_p10 }
  0xd2   : > { %p669_p4 = pnand %p668_p1, %p662_p0 }
  0xd4   : > { %672 = shalt.err (!%p669_p4)  }
  0xd5   : > { %s673_s28 = scalar_lea.vmem %s230_s16, 16  ;;  %p678_p11 = scmp.lt.s32.totalorder %s230_s16, %s965_s17 }
  0xd6   : > { %p674_p13 = scmp.ne.s32.totalorder %s230_s16, %s673_s28  ;;  %p679_p3 = scmp.lt.s32.totalorder %s968_s20, %s673_s28 }
  0xd8   : > { %p680_p9 = por %p679_p3, %p678_p11 }
  0xda   : > { %p681_p12 = pnand %p680_p9, %p674_p13 }
  0xdc   : > { %684 = shalt.err (!%p681_p12)  }
  0xdd   : > { %232 = dma.hbm_to_vmem [thread:$0]  %s220_s15, 16, %s230_s16, [#allocation2] }
  0xde   : > { %p235_p6 = scmp.gt.s32.totalorder %s1063_s10, 0  ;;  %p419_p7 = scmp.lt.s32.totalorder %s1063_s10, 63 }
  0xdf   : > { %s249_s21 = sshll.u32 %s241_s14, 4  ;;  %s254_s13 = sld [smem:[#allocation4 + %s253_s26]]  ;;  %s250_s21 = int_to_ptr.vmem [resolvable:$true] %s249_s21 }
  0xe0   : > { %s1207_s10 = smov (!%p235_p6, %s1063_s10), 0  ;;  %s261_s8 = scalar_lea.vmem %s931_s6, 7 [#allocation8] }
  0xe1   : > { %s1209_s10 = smov (!%p419_p7, %s1207_s10), 63 }
  0xe2   : > { %s424_s1 = sshll.u32 %s1209_s10, 4 }
  0xe3   : > { %s240_s27 = scalar_lea.hbm %s1158_s2, %s424_s1 }
  0xe4   : > { %s685_s16 = scalar_lea.hbm %s240_s27, 16  ;;  %p688_p5 = scmp.lt.u32.totalorder %s240_s27, %s1158_s2 }
  0xe5   : > { %p255_p0 = scmp.gt.s32.totalorder %s254_s13, 0  ;;  %p686_p8 = scmp.ne.s32.totalorder %s240_s27, %s685_s16 }
  0xe6   : > { %p689_p10 = scmp.lt.u32.totalorder %s957_s11, %s685_s16  ;;  %p691_p1 = scmp.lt.u32.totalorder %s685_s16, %s240_s27 }
  0xe8   : > { %p690_p2 = por %p689_p10, %p688_p5 }
  0xea   : > { %p692_p4 = por %p691_p1, %p690_p2 }
  0xec   : > { %p693_p13 = pnand %p692_p4, %p686_p8 }
  0xee   : > { %696 = shalt.err (!%p693_p13)  }
  0xef   : > { %s697_s14 = scalar_lea.vmem %s250_s21, 16  ;;  %p702_p3 = scmp.lt.s32.totalorder %s250_s21, %s965_s17 }
  0xf0   : > { %p698_p11 = scmp.ne.s32.totalorder %s250_s21, %s697_s14  ;;  %p703_p9 = scmp.lt.s32.totalorder %s968_s20, %s697_s14 }
  0xf2   : > { %p704_p12 = por %p703_p9, %p702_p3 }
  0xf4   : > { %p705_p6 = pnand %p704_p12, %p698_p11 }
  0xf6   : > { %708 = shalt.err (!%p705_p6)  }
  0xf7   : > { %252 = dma.hbm_to_vmem [thread:$0]  %s240_s27, 16, %s250_s21, [#allocation2] }
  0xf8   : > { %s256_s10 = scalar_select %p255_p0, %s254_s13, 0 }
  0xf9   : > { %p425_p7 = scmp.lt.s32.totalorder %s254_s13, 63  ;;  %s269_s15 = sshll.u32 %s261_s8, 4  ;;  %s270_s15 = int_to_ptr.vmem [resolvable:$true] %s269_s15 }
  0xfb   : > { %s1211_s10 = smov (!%p425_p7, %s256_s10), 63 }
  0xfc   : > { %s430_s26 = sshll.u32 %s1211_s10, 4 }
  0xfd   : > { %s260_s24 = scalar_lea.hbm %s1158_s2, %s430_s26 }
  0xfe   : > { %s709_s28 = scalar_lea.hbm %s260_s24, 16  ;;  %p712_p5 = scmp.lt.u32.totalorder %s260_s24, %s1158_s2 }
  0xff   : > { %p710_p8 = scmp.ne.s32.totalorder %s260_s24, %s709_s28  ;;  %p713_p10 = scmp.lt.u32.totalorder %s957_s11, %s709_s28 }
 0x100   : > { %p715_p1 = scmp.lt.u32.totalorder %s709_s28, %s260_s24 }
 0x101   : > { %p714_p2 = por %p713_p10, %p712_p5 }
 0x103   : > { %p716_p4 = por %p715_p1, %p714_p2 }
 0x105   : > { %p717_p0 = pnand %p716_p4, %p710_p8 }
 0x107   : > { %720 = shalt.err (!%p717_p0)  }
 0x108   : > { %s721_s21 = scalar_lea.vmem %s270_s15, 16  ;;  %p726_p11 = scmp.lt.s32.totalorder %s270_s15, %s965_s17 }
 0x109   : > { %p722_p13 = scmp.ne.s32.totalorder %s270_s15, %s721_s21  ;;  %p727_p3 = scmp.lt.s32.totalorder %s968_s20, %s721_s21 }
 0x10b   : > { %p728_p9 = por %p727_p3, %p726_p11 }
 0x10d   : > { %p729_p12 = pnand %p728_p9, %p722_p13 }
 0x10f   : > { %732 = shalt.err (!%p729_p12)  }
 0x110   : > { %272 = dma.hbm_to_vmem [thread:$0]  %s260_s24, 16, %s270_s15, [#allocation2] }
 0x111   : > { %783 = dma.done.wait [#allocation2], 128 }
 0x112   : > { %784 = vsyncadd [#allocation2], 4294967168  ;;  %s432_s11 = sshll.u32 %s861_s0, 7  ;;  %v277_v0 = vld [vmem:[%s931_s6] sm:$0xff]  ;;  %v278_v1 = vld [vmem:[#allocation5] sm:$0xff]  ;;  %s1181_s27 = sand.u32 1, %s795_s23  }
 0x113   : > { %v279_v2 = vadd.f32 %v278_v1, %v277_v0  ;;  %s293_s9 = scalar_lea.hbm %s1159_s3, %s432_s11  ;;  %s282_s16 = scalar_lea.sflag [#allocation7], %s1181_s27 }
 0x114   : > { %s733_s29 = scalar_lea.vmem %s936_s7, 128  ;;  %p1182_p7 = scmp.ne.s32.totalorder %s1172_s4, 0 }
 0x115   : > { %280 = vst [vmem:[%s931_s6] sm:$0xff] %v279_v2  ;;  %p734_p6 = scmp.ne.s32.totalorder %s936_s7, %s733_s29  ;;  %p741_p10 = scmp.lt.s32.totalorder %s968_s20, %s733_s29 }
 0x116   : > { %p1183_p2 = scmp.lt.s32.totalorder %s936_s7, %s965_s17 }
 0x117   : > { %p735_p8 = pnand %p734_p6, %p1182_p7 }
 0x118   : > { %p742_p1 = por %p741_p10, %p1183_p2 }
 0x119   : > { %p736_p5 = pneg %p735_p8 }
 0x11b   : > { %p743_p4 = pnand %p742_p1, %p736_p5 }
 0x11d   : > { %746 = shalt.err (!%p743_p4)
}
 0x11e   : > { %s747_s0 = scalar_lea.hbm %s293_s9, 128  ;;  %s751_s14 = scalar_lea.hbm %s1159_s3, 256 }
 0x11f   : > { %p748_p0 = scmp.ne.s32.totalorder %s293_s9, %s747_s0  ;;  %p752_p3 = scmp.lt.u32.totalorder %s293_s9, %s1159_s3 }
 0x120   : > { %p753_p9 = scmp.lt.u32.totalorder %s751_s14, %s747_s0  ;;  %p755_p6 = scmp.lt.u32.totalorder %s747_s0, %s293_s9 }
 0x121   : > { %p749_p13 = pnand %p748_p0, %p1182_p7 }
 0x122   : > { %p754_p12 = por %p753_p9, %p752_p3 }
 0x123   : > { %p750_p11 = pneg %p749_p13 }
 0x124   : > { %p756_p8 = por %p755_p6, %p754_p12 }
 0x126   : > { %p757_p5 = pnand %p756_p8, %p750_p11 }
 0x128   : > { %760 = shalt.err (!%p757_p5)
}
 0x129   : > { %456 = dma.vmem_to_hbm [thread:$0]  (%p1182_p7), %s936_s7, 128, %s293_s9, %s282_s16  }
 0x12a PF: > { %p468_p10 = scmp.ge.s32.totalorder %s803_s25, 2  ;;  %s307_s17 = sand.u32 1, %s791_s22  }
 0x12b   : > { %p1184_p2 = scmp.ne.s32.totalorder %s1173_s5, 0  ;;  %s308_s20 = scalar_lea.sflag [#allocation7], %s307_s17 }
 0x12d   : > { %p463_p1 = pnand %p468_p10, %p1184_p2 }
 0x12f   : > { %786 = dma.done.wait (!%p463_p1), %s308_s20, 128  }
 0x130   : > { %788 = vsyncadd (!%p463_p1), %s308_s20, 4294967168  ;;  %s1185_s25 = sld [smem:[#allocation32_spill]]  ;;  %s1186_s26 = sld [smem:[#allocation31_spill]] }
 0x131   : > { %s1187_s24 = sld [smem:[#allocation33_spill]]  ;;  %s1188_s22 = smov %s795_s23 }
 0x136   : > { %p18_p4 = scmp.ge.s32.totalorder %s1185_s25, 4   ;;  %s1189_s23 = smov %s1186_s26 }
 0x138   :  { %20 = sbr.rel (!%p18_p4) target bundleno = 16 (0x10), region = 108 }
 0x13f   :  { %313 = vsyncpa [#allocation6], 1 }
 0x140   :  { %315 = vsyncpa [#allocation6 + $0x1], 1 }
 0x141   :  { %316 = vsyncpa [#allocation7], 1 }
 0x142   :  { %318 = vsyncpa [#allocation7 + $0x1], 1 }
 0x143   :  { %319 = vsyncmov [#allocation2] }
 0x146   :  { %s320_s4 = vpop.sfrf %319 }
 0x147   :  { %p435_p7 = scmp.ne.s32.totalorder %s320_s4, 0 }
 0x149   :  { %324 = shalt.err (%p435_p7)  }

</bundles_post_ra>
